<compile_context>
chip_gen: v7x
topology: tpu7x:2x2x1
jax: 0.10.0
libtpu: 0.0.40
codegen_flags: <defaults>
</compile_context>

<pallas_src>
import functools

import jax
import jax.numpy as jnp
from jax.experimental import pallas as pl
from jax.experimental.pallas import tpu as pltpu


def _soft_ce_kernel(x_ref, t_ref, o_ref, *, inv_temp, t_is_prob):
    # inv_temp / t_is_prob are plain Python scalars (compile-time constants),
    # so nothing is captured by the kernel trace (fixes the previous
    # "captures constants [f32[]]" error).
    x = x_ref[...].astype(jnp.float32)                          # (tb, C)
    if inv_temp != 1.0:
        x = x * inv_temp

    # Numerically stable logsumexp along the class (lane) axis.
    x_max = jnp.max(x, axis=-1, keepdims=True)                  # (tb, 1)
    lse = x_max + jnp.log(jnp.sum(jnp.exp(x - x_max), axis=-1, keepdims=True))

    t = t_ref[...].astype(jnp.float32)                          # (tb, C)
    if not t_is_prob:
        if inv_temp != 1.0:
            t = t * inv_temp
        t_max = jnp.max(t, axis=-1, keepdims=True)
        t_exp = jnp.exp(t - t_max)
        t = t_exp * pl.reciprocal(
            jnp.sum(t_exp, axis=-1, keepdims=True), approx=False)

    # loss_i = sum_j t_ij * (lse_i - x_ij) = lse_i * sum_j t_ij - sum_j t_ij*x_ij
    # (t_sum is exactly the reference semantics even if the supplied target
    #  does not sum to 1.)
    t_sum = jnp.sum(t, axis=-1, keepdims=True)                  # (tb, 1)
    tx = jnp.sum(t * x, axis=-1, keepdims=True)                 # (tb, 1)
    row_loss = lse * t_sum - tx                                 # (tb, 1)

    # One partial sum per grid block -> independent output block per step.
    o_ref[...] = jnp.sum(row_loss, keepdims=True).reshape(1, 1, 1)


def _pick_batch_tile(n, c, itemsize, vmem_budget_bytes):
    """Largest multiple-of-8 divisor of n whose streamed-input VMEM footprint
    (2 inputs x 2 pipeline buffers x tb*C*itemsize) fits the budget."""
    per_row = 4 * c * itemsize                  # 2 inputs x 2 buffers
    tb = max(8, (vmem_budget_bytes // per_row) // 8 * 8)
    tb = min(tb, n)
    while tb > 8 and n % tb != 0:
        tb -= 8
    if tb <= 0 or n % tb != 0:
        tb = n                                  # small / awkward batch: single block
    return tb


def soft_target_cross_entropy(x, target, temperature: float = 1.0,
                              t_is_prob: bool = True, block_batch: int = None,
                              vmem_budget_bytes: int = 8 * 1024 * 1024):
    """Pallas implementation of SoftTargetCrossEntropy.forward. Returns a scalar.

    vmem_budget_bytes bounds the live streamed-input buffers; the 8 MiB default
    fits comfortably inside the default scoped VMEM on v5e (16 MiB), v6e and
    v7x (32 MiB).  The kernel is HBM-bandwidth bound: feeding x / target as
    bf16 halves the traffic (the kernel upcasts to f32 internally).
    """
    assert x.shape == target.shape and x.ndim == 2, "expected (N, C) inputs"
    n, c = x.shape
    itemsize = max(jnp.dtype(x.dtype).itemsize, jnp.dtype(target.dtype).itemsize)
    if block_batch is None:
        tb = _pick_batch_tile(n, c, itemsize, vmem_budget_bytes)
    else:
        tb = min(block_batch, n)
        assert n % tb == 0, "batch must be divisible by the batch tile"
    num_blocks = n // tb

    # TODO(synk): for vocab-sized C (row bytes >> VMEM budget), add a class-tile
    # grid axis with an online logsumexp instead of a full (tb, C) row in VMEM.

    kernel = functools.partial(
        _soft_ce_kernel,
        inv_temp=float(1.0 / temperature),   # Python float: no captured constant
        t_is_prob=bool(t_is_prob),
    )

    partials = pl.pallas_call(
        kernel,
        out_shape=jax.ShapeDtypeStruct((num_blocks, 1, 1), jnp.float32),
        grid_spec=pltpu.PrefetchScalarGridSpec(
            num_scalar_prefetch=0,
            grid=(num_blocks,),
            in_specs=[
                pl.BlockSpec((tb, c), lambda i: (i, 0)),
                pl.BlockSpec((tb, c), lambda i: (i, 0)),
            ],
            out_specs=pl.BlockSpec((1, 1, 1), lambda i: (i, 0, 0)),
        ),
        compiler_params=pltpu.CompilerParams(
            # Per-block partials are independent -> safe to shard across
            # TensorCores (v7x); harmless on single-TC v5e/v6e.
            dimension_semantics=("parallel",),
        ),
    )(x, target)

    return jnp.sum(partials) / jnp.float32(n)


def _reference(x, target, temperature=1.0, t_is_prob=True):
    x32 = x.astype(jnp.float32)
    t32 = target.astype(jnp.float32)
    if not t_is_prob:
        t32 = jax.nn.softmax(t32 / temperature, axis=1)
    logp = jax.nn.log_softmax(x32 / temperature, axis=1)
    return jnp.mean(jnp.sum(-t32 * logp, axis=1))


if __name__ == "__main__":
    key = jax.random.PRNGKey(0)
    k1, k2, k3, k4 = jax.random.split(key, 4)

    ok = True

    # Case 1: (8, 32), t_is_prob=True, temperature=1.0 (default path)
    N, C = 8, 32
    x = jax.random.normal(k1, (N, C), dtype=jnp.float32)
    raw_t = jax.random.normal(k2, (N, C), dtype=jnp.float32)
    target_prob = jax.nn.softmax(raw_t, axis=1)
    out1 = jax.block_until_ready(soft_target_cross_entropy(x, target_prob))
    ref1 = _reference(x, target_prob)
    ok &= bool(jnp.allclose(out1, ref1, atol=1e-5, rtol=1e-5))

    # Case 2: t_is_prob=False, temperature=2.0 (target softmax done in-kernel)
    out2 = jax.block_until_ready(
        soft_target_cross_entropy(x, raw_t, temperature=2.0, t_is_prob=False))
    ref2 = _reference(x, raw_t, temperature=2.0, t_is_prob=False)
    ok &= bool(jnp.allclose(out2, ref2, atol=1e-5, rtol=1e-5))

    # Case 3: multi-block grid (parallel batch tiling, per-block partials)
    N2, C2 = 32, 128
    x2 = jax.random.normal(k3, (N2, C2), dtype=jnp.float32)
    t2 = jax.random.normal(k4, (N2, C2), dtype=jnp.float32)
    out3 = jax.block_until_ready(
        soft_target_cross_entropy(x2, t2, temperature=1.5, t_is_prob=False,
                                  block_batch=8))
    ref3 = _reference(x2, t2, temperature=1.5, t_is_prob=False)
    ok &= bool(jnp.allclose(out3, ref3, atol=1e-5, rtol=1e-5))

    if ok:
        print("KERNEL_OK")
    else:
        print("MISMATCH",
              float(out1), float(ref1),
              float(out2), float(ref2),
              float(out3), float(ref3))
</pallas_src>

<mosaic_0001>
module attributes {stable_mosaic.version = 11 : i64} {
  func.func @_soft_ce_kernel(%arg0: i32, %arg1: memref<8x32xf32, #tpu.memory_space<vmem>>, %arg2: memref<8x32xf32, #tpu.memory_space<vmem>>, %arg3: memref<1x1x1xf32, #tpu.memory_space<vmem>>) attributes {dimension_semantics = [#tpu.dimension_semantics<parallel>], iteration_bounds = array<i64: 1>, scalar_prefetch = 0 : i64, scratch_operands = 0 : i64, tpu.core_type = #tpu.core_type<tc>, window_params = [{transform_indices = @transform_0, window_bounds = array<i64: 8, 32>}, {transform_indices = @transform_1, window_bounds = array<i64: 8, 32>}, {transform_indices = @transform_2, window_bounds = array<i64: 1, 1, 1>}]} {
    %c0 = arith.constant 0 : index
    %c0_0 = arith.constant 0 : index
    %0 = vector.load %arg1[%c0, %c0_0] : memref<8x32xf32, #tpu.memory_space<vmem>>, vector<8x32xf32>
    %cst = arith.constant dense<0xFF800000> : vector<8xf32>
    %1 = vector.multi_reduction <maximumf>, %0, %cst [1] : vector<8x32xf32> to vector<8xf32>
    %2 = vector.shape_cast %1 : vector<8xf32> to vector<8x1xf32>
    %3 = vector.broadcast %2 : vector<8x1xf32> to vector<8x32xf32>
    %4 = arith.subf %0, %3 : vector<8x32xf32>
    %5 = math.exp %4 : vector<8x32xf32>
    %cst_1 = arith.constant dense<0.000000e+00> : vector<8xf32>
    %6 = vector.multi_reduction <add>, %5, %cst_1 [1] : vector<8x32xf32> to vector<8xf32>
    %7 = vector.shape_cast %6 : vector<8xf32> to vector<8x1xf32>
    %8 = math.log %7 : vector<8x1xf32>
    %9 = arith.addf %2, %8 : vector<8x1xf32>
    %c0_2 = arith.constant 0 : index
    %c0_3 = arith.constant 0 : index
    %10 = vector.load %arg2[%c0_2, %c0_3] : memref<8x32xf32, #tpu.memory_space<vmem>>, vector<8x32xf32>
    %cst_4 = arith.constant dense<0.000000e+00> : vector<8xf32>
    %11 = vector.multi_reduction <add>, %10, %cst_4 [1] : vector<8x32xf32> to vector<8xf32>
    %12 = vector.shape_cast %11 : vector<8xf32> to vector<8x1xf32>
    %13 = arith.mulf %10, %0 : vector<8x32xf32>
    %cst_5 = arith.constant dense<0.000000e+00> : vector<8xf32>
    %14 = vector.multi_reduction <add>, %13, %cst_5 [1] : vector<8x32xf32> to vector<8xf32>
    %15 = vector.shape_cast %14 : vector<8xf32> to vector<8x1xf32>
    %16 = arith.mulf %9, %12 : vector<8x1xf32>
    %17 = arith.subf %16, %15 : vector<8x1xf32>
    %18 = vector.shape_cast %17 : vector<8x1xf32> to vector<1x8x1xf32>
    %cst_6 = arith.constant dense<0.000000e+00> : vector<1xf32>
    %19 = vector.multi_reduction <add>, %18, %cst_6 [1, 2] : vector<1x8x1xf32> to vector<1xf32>
    %20 = vector.shape_cast %19 : vector<1xf32> to vector<1x1x1xf32>
    %21 = vector.extract %20[0, 0, 0] : f32 from vector<1x1x1xf32>
    %22 = vector.broadcast %21 : f32 to vector<1x1xf32>
    %23 = vector.shape_cast %22 : vector<1x1xf32> to vector<1x1x1xf32>
    %c0_7 = arith.constant 0 : index
    %c0_8 = arith.constant 0 : index
    %c0_9 = arith.constant 0 : index
    %24 = vector.load %arg3[%c0_7, %c0_8, %c0_9] : memref<1x1x1xf32, #tpu.memory_space<vmem>>, vector<1x1x1xf32>
    tpu.vector_store %arg3[%c0_7, %c0_8, %c0_9], %23 {strides = array<i32>} : memref<1x1x1xf32, #tpu.memory_space<vmem>>, vector<1x1x1xf32>,
    return
  }
  func.func @transform_0(%arg0: i32) -> (i32, i32) {
    %c0_i32 = arith.constant 0 : i32
    %c0_i32_0 = arith.constant 0 : i32
    return %arg0, %c0_i32 : i32, i32
  }
  func.func @transform_1(%arg0: i32) -> (i32, i32) {
    %c0_i32 = arith.constant 0 : i32
    %c0_i32_0 = arith.constant 0 : i32
    return %arg0, %c0_i32 : i32, i32
  }
  func.func @transform_2(%arg0: i32) -> (i32, i32, i32) {
    %c0_i32 = arith.constant 0 : i32
    %c0_i32_0 = arith.constant 0 : i32
    %c0_i32_1 = arith.constant 0 : i32
    return %arg0, %c0_i32, %c0_i32_0 : i32, i32, i32
  }
}

</mosaic_0001>

<bundles_post_ra>
// kernel: tpu_custom_call.1
= control target key start
LH: loop header
LB: loop body
LE: loop exit
PB: predicated region body
PF: predicated region fallthrough
CT: control target
= control target key end

     0   :  { %7 = vsyncpa [#allocation3], 0  ;;  %s225_s0 = inlined_call_operand.hbm [shape: f32[8,32], index: 0, kind: input, shape index: {}]   ;;  %s226_s1 = inlined_call_operand.hbm [shape: f32[8,32], index: 1, kind: input, shape index: {}]   ;;  %s227_s2 = inlined_call_operand.hbm [shape: f32[1,1,1], index: 2, kind: output, shape index: {}]  }
   0x1   :  { %8 = vsyncpa [#allocation6], 0 }
   0x2   :  { %9 = vsyncpa [#allocation4], 0  ;;  %s171_s9 = smov [#allocation2]   ;;  %s172_s11 = smov [#allocation5]  }
   0x3   :  { %s16_s10 = sshll.u32 %s171_s9, 4  ;;  %s26_s12 = sshll.u32 %s172_s11, 4  ;;  %s17_s10 = int_to_ptr.vmem [resolvable:$true] %s16_s10  ;;  %s27_s12 = int_to_ptr.vmem [resolvable:$true] %s26_s12 }
   0x4   :  { %s99_s15 = scalar_lea.hbm %s225_s0, 128 }
   0x5   :  { %p100_p0 = scmp.ne.s32.totalorder %s225_s0, %s99_s15  ;;  %p103_p1 = scmp.lt.u32.totalorder %s99_s15, %s225_s0 }
   0x7   :  { %p105_p2 = pnand %p103_p1, %p100_p0 }
   0x9   :  { %108 = shalt.err (!%p105_p2)
}
   0xa   :  { %s109_s20 = scalar_lea.vmem %s17_s10, 128  ;;  %p114_p4 = scmp.lt.s32.totalorder %s17_s10, %s17_s10 }
   0xb   :  { %p110_p3 = scmp.ne.s32.totalorder %s17_s10, %s109_s20  ;;  %p115_p5 = scmp.lt.s32.totalorder %s109_s20, %s109_s20 }
   0xd   :  { %p116_p6 = por %p115_p5, %p114_p4 }
   0xf   :  { %p117_p7 = pnand %p116_p6, %p110_p3 }
  0x11   :  { %120 = shalt.err (!%p117_p7)
}
  0x12   :  { %19 = dma.hbm_to_vmem [thread:$0]  %s225_s0, 128, %s17_s10, [#allocation3]  }
  0x13   :  { %s121_s25 = scalar_lea.hbm %s226_s1, 128 }
  0x14   :  { %p122_p8 = scmp.ne.s32.totalorder %s226_s1, %s121_s25  ;;  %p125_p9 = scmp.lt.u32.totalorder %s121_s25, %s226_s1 }
  0x16   :  { %p127_p10 = pnand %p125_p9, %p122_p8 }
  0x18   :  { %130 = shalt.err (!%p127_p10)
}
  0x19   :  { %s131_s30 = scalar_lea.vmem %s27_s12, 128  ;;  %p136_p12 = scmp.lt.s32.totalorder %s27_s12, %s27_s12 }
  0x1a   :  { %p132_p11 = scmp.ne.s32.totalorder %s27_s12, %s131_s30  ;;  %p137_p13 = scmp.lt.s32.totalorder %s131_s30, %s131_s30 }
  0x1c   :  { %p138_p0 = por %p137_p13, %p136_p12 }
  0x1e   :  { %p139_p1 = pnand %p138_p0, %p132_p11 }
  0x20   :  { %142 = shalt.err (!%p139_p1)
}
  0x21   :  { %29 = dma.hbm_to_vmem [thread:$0]  %s226_s1, 128, %s27_s12, [#allocation6]  }
  0x22   :  { %165 = dma.done.wait [#allocation3], 128  }
  0x23   :  { %166 = vsyncadd [#allocation3], 4294967168 }
  0x24   :  { %167 = dma.done.wait [#allocation6], 128  }
  0x25   :  { %168 = vsyncadd [#allocation6], 4294967168  ;;  %vm37_vm0 = vcmask 261120   ;;  %v36_v0 = vld [vmem:[#allocation2] sm:$0xff]  ;;  %v50_v2 = vld [vmem:[#allocation5] sm:$0xff]  ;;  %vm60_vm1 = vcmask 7168  }
  0x26   :  { %v38_v1 = vsel %vm37_vm0, %v36_v0, -inf  ;;  %v51_v3 = vsel %vm37_vm0, %v50_v2, 0.0  ;;  %v54_v4 = vmul.f32 %v50_v2, %v36_v0  ;;  %s173_s1 = smov [#allocation7]   ;;  %vm72_vm2 = vcmask 0  }
  0x27   :  { %39 = vmax.xlane.f32.xlu0 %v38_v1  ;;  %52 = vadd.xlane.f32.xlu1 %v51_v3  ;;  %s80_s4 = sshll.u32 %s173_s1, 4  ;;  %s81_s4 = int_to_ptr.vmem [resolvable:$true] %s80_s4 }
  0x28   :  { %v55_v5 = vsel %vm37_vm0, %v54_v4, 0.0  ;;  %s143_s6 = scalar_lea.vmem %s81_s4, 16  ;;  %s147_s7 = scalar_lea.vmem %s81_s4, 32 }
  0x29   :  { %p144_p2 = scmp.ne.s32.totalorder %s81_s4, %s143_s6  ;;  %p148_p3 = scmp.lt.s32.totalorder %s81_s4, %s81_s4 }
  0x2a   :  { %p149_p4 = scmp.lt.s32.totalorder %s147_s7, %s143_s6 }
  0x2b   :  { %56 = vadd.xlane.f32.xlu1 %v55_v5 }
  0x2c   :  { %p150_p5 = por %p149_p4, %p148_p3 }
  0x2e   :  { %p151_p6 = pnand %p150_p5, %p144_p2 }
  0xb4   :  { %v40_v6 = vpop.xlane.xlu0 %39  ;;  %v53_v12 = vpop.xlane.xlu1 %52 }
  0xb5   :  { %v41_v7 = vsub.f32 %v36_v0, %v40_v6 }
  0xb7   :  { %v42_v8 = vmul.f32 1.442695, %v41_v7 }
  0xb8   :  { %v57_v16 = vpop.xlane.xlu1 %56 }
  0xb9   :  { %95 = vpow2.f32 %v42_v8 }
  0xc3   :  { %v96_v9 = vpop.eup %95 }
  0xc4   :  { %v44_v10 = vsel %vm37_vm0, %v96_v9, 0.0 }
  0xc5   :  { %45 = vadd.xlane.f32.xlu0 %v44_v10 }
 0x152   :  { %v46_v11 = vpop.xlane.xlu0 %45 }
 0x153   :  { %97 = vlog2.f32 %v46_v11 }
 0x15d   :  { %v98_v13 = vpop.eup %97 }
 0x15e   :  { %v48_v14 = vmul.f32 0.6931472, %v98_v13 }
 0x160   :  { %v49_v15 = vadd.f32 %v48_v14, %v40_v6 }
 0x162   :  { %v58_v17 = vmul.f32 %v53_v12, %v49_v15 }
 0x164   :  { %v59_v18 = vsub.f32 %v58_v17, %v57_v16 }
 0x166   :  { %v61_v19 = vsel %vm60_vm1, %v59_v18, 0.0 }
 0x167   :  { %62 = vadd.xlane.f32.xlu0 %v61_v19 }
 0x1f4   :  { %v63_v20 = vpop.xlane.xlu0 %62 }
 0x1f5   :  { %v64_v21 = vrot.slane %v63_v20, 4 }
 0x1f7   :  { %v65_v22 = vadd.f32 %v64_v21, %v63_v20 }
 0x1f9   :  { %v66_v23 = vrot.slane %v65_v22, 2 }
 0x1fb   :  { %v67_v24 = vadd.f32 %v66_v23, %v65_v22 }
 0x1fd   :  { %v68_v25 = vrot.slane %v67_v24, 1 }
 0x1ff   :  { %v69_v26 = vadd.f32 %v68_v25, %v67_v24 }
 0x201   :  { %90 = vpush %v69_v26 }
 0x232   :  { %s91_s5 = spop %90 }
 0x233   :  { %v71_v27 = vstv %s91_s5 }
 0x234   :  { %73 = vst.msk [vmem:[#allocation7] sm:$0x1] %vm72_vm2, %v71_v27 }
 0x235   :  { %154 = shalt.err (!%p151_p6)
}
 0x236   :  { %s155_s10 = scalar_lea.hbm %s227_s2, 16 }
 0x237   :  { %p156_p7 = scmp.ne.s32.totalorder %s227_s2, %s155_s10  ;;  %p159_p8 = scmp.lt.u32.totalorder %s155_s10, %s227_s2 }
 0x239   :  { %p161_p9 = pnand %p159_p8, %p156_p7 }
 0x23b   :  { %164 = shalt.err (!%p161_p9)
}
 0x23c   :  { %83 = dma.vmem_to_hbm [thread:$0]  %s81_s4, 16, %s227_s2, [#allocation4]  }
 0x23d   :  { %169 = dma.done.wait [#allocation4], 16  }
 0x23e   :  { %170 = vsyncadd [#allocation4], 4294967280 }
 0x23f   :  { %87 = vsyncpa [#allocation3], 1 }
 0x240   :  { %88 = vsyncpa [#allocation6], 1 }
 0x241   :  { %89 = vsyncpa [#allocation4], 1 }

</bundles_post_ra>
